<compile_context>
chip_gen: v7x
topology: tpu7x:2x2x1
jax: 0.10.0
libtpu: 0.0.40
codegen_flags: <defaults>
</compile_context>

<pallas_src>
import jax
import jax.numpy as jnp
from jax.experimental import pallas as pl
from jax.experimental.pallas import tpu as pltpu

_LANE = 128          # vreg lane width
_SUBLANE_BF16 = 16   # bf16 packs 16 sublanes per vreg -> batch tiles in x16


def _round_up(v, m):
    return ((v + m - 1) // m) * m


# ----------------------------------------------------------------------------
# Kernel
# ----------------------------------------------------------------------------
def _late_fusion_kernel(x_ref, w1_ref, b1_ref, w2_ref, b2_ref, out_ref):
    # Cast x to bf16 *inside* the kernel (no extra wrapper-side HBM pass);
    # no-op if the caller already supplies bf16 activations.
    x = x_ref[...].astype(jnp.bfloat16)
    # Layer 1: bf16 operands on the MXU, f32 accumulation.
    h = jnp.dot(x, w1_ref[...], preferred_element_type=jnp.float32)
    h = jnp.maximum(h + b1_ref[...], 0.0)            # bias + ReLU in f32
    # Dropout: identity in eval mode.
    # TODO(synk): training-mode dropout via pltpu.prng_seed + stateful_bernoulli.
    # Layer 2: cast activation to bf16 for the MXU, accumulate f32, add bias.
    o = jnp.dot(h.astype(jnp.bfloat16), w2_ref[...],
                preferred_element_type=jnp.float32)
    out_ref[...] = (o + b2_ref[...]).astype(out_ref.dtype)


# ----------------------------------------------------------------------------
# One-time parameter preparation (hoisted out of the per-call path)
# ----------------------------------------------------------------------------
def prepare_params(w1, b1, w2, b2):
    """Pad hidden/class dims to 128 lanes and cast weights to bf16, once.

    w1: (F, H), b1: (H,), w2: (H, C), b2: (C,)  — (in_dim, out_dim) layout, so
    the kernel computes x @ W + b (== PyTorch x @ W.T + b).
    Returns (w1_p, b1_p, w2_p, b2_p) with shapes (F,Hp) bf16, (1,Hp) f32,
    (Hp,Cp) bf16, (1,Cp) f32. Padded entries are exactly zero (required).
    """
    F, H = w1.shape
    C = w2.shape[1]
    Hp = _round_up(H, _LANE)
    Cp = _round_up(C, _LANE)

    w1_p = jnp.zeros((F, Hp), jnp.bfloat16).at[:, :H].set(w1.astype(jnp.bfloat16))
    b1_p = jnp.zeros((1, Hp), jnp.float32).at[0, :H].set(b1.astype(jnp.float32))
    w2_p = jnp.zeros((Hp, Cp), jnp.bfloat16).at[:H, :C].set(w2.astype(jnp.bfloat16))
    b2_p = jnp.zeros((1, Cp), jnp.float32).at[0, :C].set(b2.astype(jnp.float32))
    return w1_p, b1_p, w2_p, b2_p


def _vmem_limit_bytes(TB, F, Hp, Cp, x_itemsize, out_itemsize):
    # Resident weights are single-buffered (Buffered(1)); x/out tiles are
    # double-buffered by the pipeline. Generous 2x margin + 4 MiB for
    # compiler-internal scratch, capped safely below v7x's 64 MiB physical VMEM.
    weights = (F * Hp + Hp * Cp) * 2        # bf16
    biases = (Hp + Cp) * 4                  # f32
    x_bufs = 2 * TB * F * x_itemsize
    o_bufs = 2 * TB * Cp * out_itemsize
    need = weights + biases + x_bufs + o_bufs
    return int(min(max(2 * need + (4 << 20), 16 << 20), 60 << 20))


# ----------------------------------------------------------------------------
# Forward
# ----------------------------------------------------------------------------
def late_fusion_forward(x, w1_p, b1_p, w2_p, b2_p, n_classes, *,
                        batch_tile=512, out_dtype=jnp.float32):
    """Fused MLP forward using pre-prepared (padded, bf16) parameters.

    x: (B, F) float32 or bfloat16. Returns (B, n_classes) in out_dtype
    (pass out_dtype=jnp.bfloat16 to halve output writeback if downstream
    tolerates bf16).
    """
    B, F = x.shape
    Hp = w1_p.shape[1]
    Cp = w2_p.shape[1]

    # Batch tile: multiple of 16 sublanes (bf16 packing), capped at batch_tile
    # (default 512 — per-step overhead ~0.35 us, so bigger tiles amortize it).
    TB = min(_round_up(B, _SUBLANE_BF16), _round_up(batch_tile, _SUBLANE_BF16))
    grid = (pl.cdiv(B, TB),)   # no host-side batch pad; last block is masked

    vmem_limit = _vmem_limit_bytes(TB, F, Hp, Cp,
                                   jnp.dtype(x.dtype).itemsize,
                                   jnp.dtype(out_dtype).itemsize)

    # Weights/biases: constant block index -> keep VMEM-resident across the
    # whole grid and single-buffer them (no point double-buffering an
    # invariant operand; halves the resident-weight footprint for v7x).
    w_pipe = pl.Buffered(1)

    out_p = pl.pallas_call(
        _late_fusion_kernel,
        out_shape=jax.ShapeDtypeStruct((B, Cp), out_dtype),
        grid_spec=pltpu.PrefetchScalarGridSpec(
            num_scalar_prefetch=0,
            grid=grid,
            in_specs=[
                pl.BlockSpec((TB, F), lambda i: (i, 0)),   # batch-tiled activations
                pl.BlockSpec((F, Hp), lambda i: (0, 0), pipeline_mode=w_pipe),
                pl.BlockSpec((1, Hp), lambda i: (0, 0), pipeline_mode=w_pipe),
                pl.BlockSpec((Hp, Cp), lambda i: (0, 0), pipeline_mode=w_pipe),
                pl.BlockSpec((1, Cp), lambda i: (0, 0), pipeline_mode=w_pipe),
            ],
            out_specs=pl.BlockSpec((TB, Cp), lambda i: (i, 0)),
        ),
        compiler_params=pltpu.CompilerParams(
            # Batch axis is fully independent. On v7x, with >=2 grid steps this
            # can be sharded across both TensorCores (pltpu.CORE_PARALLEL is an
            # option there); harmless on single-TC v5e/v6e.
            dimension_semantics=(pltpu.PARALLEL,),
            vmem_limit_bytes=vmem_limit),
    )(x, w1_p, b1_p, w2_p, b2_p)

    return out_p[:, :n_classes]


# ----------------------------------------------------------------------------
# References
# ----------------------------------------------------------------------------
def reference_forward_bf16(x, w1, b1, w2, b2):
    """Reference applying the same bf16 operand quantization as the kernel."""
    xq = x.astype(jnp.bfloat16).astype(jnp.float32)
    w1q = w1.astype(jnp.bfloat16).astype(jnp.float32)
    w2q = w2.astype(jnp.bfloat16).astype(jnp.float32)
    h = jnp.maximum(xq @ w1q + b1, 0.0)
    hq = h.astype(jnp.bfloat16).astype(jnp.float32)
    return hq @ w2q + b2


def reference_forward_f32(x, w1, b1, w2, b2):
    h = jnp.maximum(x @ w1 + b1, 0.0)
    return h @ w2 + b2


if __name__ == "__main__":
    # Small shapes consistent with the module's forward (batch x n_features).
    batch, n_features, hidden_size, n_classes = 40, 32, 32, 8
    dropout = 0.3  # unused at inference (identity)

    key = jax.random.PRNGKey(0)
    kx, k1, k2, k3, k4, kx2 = jax.random.split(key, 6)

    x = jax.random.normal(kx, (batch, n_features), dtype=jnp.float32)

    # Deterministic parameter init, PyTorch-Linear-style uniform bounds.
    bound1 = 1.0 / (n_features ** 0.5)
    w1 = jax.random.uniform(k1, (n_features, hidden_size),
                            minval=-bound1, maxval=bound1, dtype=jnp.float32)
    b1 = jax.random.uniform(k2, (hidden_size,),
                            minval=-bound1, maxval=bound1, dtype=jnp.float32)
    bound2 = 1.0 / (hidden_size ** 0.5)
    w2 = jax.random.uniform(k3, (hidden_size, n_classes),
                            minval=-bound2, maxval=bound2, dtype=jnp.float32)
    b2 = jax.random.uniform(k4, (n_classes,),
                            minval=-bound2, maxval=bound2, dtype=jnp.float32)

    # One-time parameter preparation (padding + bf16 cast), hoisted out of the
    # per-call forward path.
    w1_p, b1_p, w2_p, b2_p = prepare_params(w1, b1, w2, b2)

    # --- Single-tile case (B=40 rows -> one 48-row tile, partial last block) ---
    out = late_fusion_forward(x, w1_p, b1_p, w2_p, b2_p, n_classes)
    out = jax.block_until_ready(out)
    assert out.shape == (batch, n_classes)

    # Exact-semantics check against a reference with the same bf16 quantization.
    ref_q = reference_forward_bf16(x, w1, b1, w2, b2)
    assert jnp.allclose(out, ref_q, atol=1e-2, rtol=1e-2)

    # Loose sanity check against the pure-f32 PyTorch-equivalent reference
    # (bf16 MXU operands introduce ~1e-3 absolute error at these magnitudes).
    ref_f32 = reference_forward_f32(x, w1, b1, w2, b2)
    assert jnp.allclose(out, ref_f32, atol=5e-2, rtol=5e-2)

    # --- Multi-step pipelined grid (4 batch tiles of 16 rows) -----------------
    # Exercises the 'parallel' batch axis that v7x can shard across TensorCores.
    batch2 = 64
    x2 = jax.random.normal(kx2, (batch2, n_features), dtype=jnp.float32)
    out2 = jax.block_until_ready(
        late_fusion_forward(x2, w1_p, b1_p, w2_p, b2_p, n_classes, batch_tile=16))
    assert out2.shape == (batch2, n_classes)
    assert jnp.allclose(out2, reference_forward_bf16(x2, w1, b1, w2, b2),
                        atol=1e-2, rtol=1e-2)

    print("KERNEL_OK")
</pallas_src>

<mosaic_0001>
module attributes {stable_mosaic.version = 11 : i64} {
  func.func @_late_fusion_kernel(%arg0: i32, %arg1: memref<48x32xf32, #tpu.memory_space<vmem>>, %arg2: memref<32x128xbf16, #tpu.memory_space<vmem>>, %arg3: memref<1x128xf32, #tpu.memory_space<vmem>>, %arg4: memref<128x128xbf16, #tpu.memory_space<vmem>>, %arg5: memref<1x128xf32, #tpu.memory_space<vmem>>, %arg6: memref<48x128xf32, #tpu.memory_space<vmem>>) attributes {dimension_semantics = [#tpu.dimension_semantics<parallel>], iteration_bounds = array<i64: 1>, scalar_prefetch = 0 : i64, scratch_operands = 0 : i64, tpu.core_type = #tpu.core_type<tc>, window_params = [{transform_indices = @transform_0, window_bounds = array<i64: 48, 32>}, {pipeline_mode = #tpu.pipeline_mode<synchronous>, transform_indices = @transform_1, window_bounds = array<i64: 32, 128>}, {pipeline_mode = #tpu.pipeline_mode<synchronous>, transform_indices = @transform_2, window_bounds = array<i64: 1, 128>}, {pipeline_mode = #tpu.pipeline_mode<synchronous>, transform_indices = @transform_3, window_bounds = array<i64: 128, 128>}, {pipeline_mode = #tpu.pipeline_mode<synchronous>, transform_indices = @transform_4, window_bounds = array<i64: 1, 128>}, {transform_indices = @transform_5, window_bounds = array<i64: 48, 128>}]} {
    %c0 = arith.constant 0 : index
    %c0_0 = arith.constant 0 : index
    %0 = vector.load %arg1[%c0, %c0_0] : memref<48x32xf32, #tpu.memory_space<vmem>>, vector<48x32xf32>
    %1 = arith.truncf %0 : vector<48x32xf32> to vector<48x32xbf16>
    %c0_1 = arith.constant 0 : index
    %c0_2 = arith.constant 0 : index
    %2 = vector.load %arg2[%c0_1, %c0_2] : memref<32x128xbf16, #tpu.memory_space<vmem>>, vector<32x128xbf16>
    %cst = arith.constant dense<0.000000e+00> : vector<48x128xf32>
    %3 = tpu.matmul %1, %2, %cst {dimension_numbers = #tpu.dot_dimension_numbers<[1], [0], [0], [1], [0, 0, 1, 1], [], []>} : vector<48x32xbf16>, vector<32x128xbf16>, vector<48x128xf32> -> vector<48x128xf32>
    %c0_3 = arith.constant 0 : index
    %c0_4 = arith.constant 0 : index
    %4 = vector.load %arg3[%c0_3, %c0_4] : memref<1x128xf32, #tpu.memory_space<vmem>>, vector<1x128xf32>
    %5 = vector.broadcast %4 : vector<1x128xf32> to vector<48x128xf32>
    %6 = arith.addf %3, %5 : vector<48x128xf32>
    %cst_5 = arith.constant 0.000000e+00 : f32
    %7 = vector.broadcast %cst_5 : f32 to vector<48x128xf32>
    %8 = arith.maximumf %6, %7 : vector<48x128xf32>
    %9 = arith.truncf %8 : vector<48x128xf32> to vector<48x128xbf16>
    %c0_6 = arith.constant 0 : index
    %c0_7 = arith.constant 0 : index
    %10 = vector.load %arg4[%c0_6, %c0_7] : memref<128x128xbf16, #tpu.memory_space<vmem>>, vector<128x128xbf16>
    %cst_8 = arith.constant dense<0.000000e+00> : vector<48x128xf32>
    %11 = tpu.matmul %9, %10, %cst_8 {dimension_numbers = #tpu.dot_dimension_numbers<[1], [0], [0], [1], [0, 0, 1, 1], [], []>} : vector<48x128xbf16>, vector<128x128xbf16>, vector<48x128xf32> -> vector<48x128xf32>
    %c0_9 = arith.constant 0 : index
    %c0_10 = arith.constant 0 : index
    %12 = vector.load %arg5[%c0_9, %c0_10] : memref<1x128xf32, #tpu.memory_space<vmem>>, vector<1x128xf32>
    %13 = vector.broadcast %12 : vector<1x128xf32> to vector<48x128xf32>
    %14 = arith.addf %11, %13 : vector<48x128xf32>
    %c0_11 = arith.constant 0 : index
    %c0_12 = arith.constant 0 : index
    %15 = vector.load %arg6[%c0_11, %c0_12] : memref<48x128xf32, #tpu.memory_space<vmem>>, vector<48x128xf32>
    tpu.vector_store %arg6[%c0_11, %c0_12], %14 {strides = array<i32>} : memref<48x128xf32, #tpu.memory_space<vmem>>, vector<48x128xf32>,
    return
  }
  func.func @transform_0(%arg0: i32) -> (i32, i32) {
    %c0_i32 = arith.constant 0 : i32
    %c0_i32_0 = arith.constant 0 : i32
    return %arg0, %c0_i32 : i32, i32
  }
  func.func @transform_1(%arg0: i32) -> (i32, i32) {
    %c0_i32 = arith.constant 0 : i32
    %c0_i32_0 = arith.constant 0 : i32
    %c0_i32_1 = arith.constant 0 : i32
    return %c0_i32, %c0_i32_0 : i32, i32
  }
  func.func @transform_2(%arg0: i32) -> (i32, i32) {
    %c0_i32 = arith.constant 0 : i32
    %c0_i32_0 = arith.constant 0 : i32
    %c0_i32_1 = arith.constant 0 : i32
    return %c0_i32, %c0_i32_0 : i32, i32
  }
  func.func @transform_3(%arg0: i32) -> (i32, i32) {
    %c0_i32 = arith.constant 0 : i32
    %c0_i32_0 = arith.constant 0 : i32
    %c0_i32_1 = arith.constant 0 : i32
    return %c0_i32, %c0_i32_0 : i32, i32
  }
  func.func @transform_4(%arg0: i32) -> (i32, i32) {
    %c0_i32 = arith.constant 0 : i32
    %c0_i32_0 = arith.constant 0 : i32
    %c0_i32_1 = arith.constant 0 : i32
    return %c0_i32, %c0_i32_0 : i32, i32
  }
  func.func @transform_5(%arg0: i32) -> (i32, i32) {
    %c0_i32 = arith.constant 0 : i32
    %c0_i32_0 = arith.constant 0 : i32
    return %arg0, %c0_i32 : i32, i32
  }
}

</mosaic_0001>

<bundles_post_ra>
// kernel: tpu_custom_call.1
= control target key start
LH: loop header
LB: loop body
LE: loop exit
PB: predicated region body
PF: predicated region fallthrough
CT: control target
= control target key end

     0   :  { %10 = vsyncpa [#allocation3], 0  ;;  %v410_v1 = vmov 0.0   ;;  %vm411_vm0 = vmmov 0   ;;  %vm54_vm1 = vcmask 261120   ;;  %s544_s0 = inlined_call_operand.vmem [shape: f32[40,32], index: 0, kind: input, shape index: {}]   ;;  %s545_s1 = inlined_call_operand.vmem [shape: bf16[32,128], index: 1, kind: input, shape index: {}]   ;;  %s546_s2 = inlined_call_operand.vmem [shape: f32[1,128], index: 2, kind: input, shape index: {}]   ;;  %s547_s3 = inlined_call_operand.vmem [shape: bf16[128,128], index: 3, kind: input, shape index: {}]   ;;  %s548_s4 = inlined_call_operand.vmem [shape: f32[1,128], index: 4, kind: input, shape index: {}]   ;;  %s549_s5 = inlined_call_operand.hbm [shape: f32[40,128], index: 5, kind: output, shape index: {}]  }
   0x1   :  { %v376_v0 = vld [vmem:[%s545_s1] sm:$0xff]   ;;  %311 = vmatprep.subr.bf16.mxu0 %v410_v1  ;;  %355 = vmatprep.subr.bf16.mxu1 %v410_v1  ;;  %v377_v2 = vld [vmem:[%s545_s1 + $0x8] sm:$0xff]   ;;  %v24_v8 = vld [vmem:[%s544_s0 + $0x10] sm:$0xff] }
   0x2   :  { %312 = vmatpush3.bf16.msra.mxu0 %v376_v0  ;;  %v22_v3 = vld [vmem:[%s544_s0] sm:$0xff]  ;;  %v23_v4 = vld [vmem:[%s544_s0 + $0x8] sm:$0xff]  ;;  %315 = vmatprep.mubr.msk.bf16.mxu0 %vm411_vm0, %v410_v1  ;;  %v25_v9 = vld [vmem:[%s544_s0 + $0x18] sm:$0xff] }
   0x3   :  { %313 = vmatprep.subr.bf16.mxu0 %v410_v1  ;;  %347 = vmatprep.mubr.msk.bf16.mxu1 %vm411_vm0, %v410_v1  ;;  %v28_v5 = vpack.c.bf16 %v23_v4, %v22_v3  ;;  %v378_v6 = vld [vmem:[%s547_s3] sm:$0xff]   ;;  %v379_v7 = vld [vmem:[%s547_s3 + $0x8] sm:$0xff]   ;;  %v29_v10 = vpack.c.bf16 %v25_v9, %v24_v8  ;;  %v380_v11 = vld [vmem:[%s547_s3 + $0x10] sm:$0xff]  }
   0x4   :  { %363 = vmatpush3.bf16.msra.mxu1 %v378_v6  ;;  %v381_v12 = vld [vmem:[%s547_s3 + $0x18] sm:$0xff]   ;;  %v26_v13 = vld [vmem:[%s544_s0 + $0x20] sm:$0xff]  ;;  %v27_v14 = vld [vmem:[%s544_s0 + $0x28] sm:$0xff] }
   0x5   :  { %356 = vmatprep.subr.bf16.mxu1 %v410_v1  ;;  %v30_v15 = vpack.c.bf16 %v27_v14, %v26_v13  ;;  %v382_v16 = vld [vmem:[%s547_s3 + $0x20] sm:$0xff]   ;;  %v383_v17 = vld [vmem:[%s547_s3 + $0x28] sm:$0xff]   ;;  %v384_v18 = vld [vmem:[%s547_s3 + $0x30] sm:$0xff]  }
   0x6   :  { %314 = vmatpush3.bf16.msra.mxu0 %v377_v2  ;;  %v385_v19 = vld [vmem:[%s547_s3 + $0x38] sm:$0xff]   ;;  %v280_v20 = vld [vmem:[%s546_s2] ss:$0 sm:$0xff] }
   0x7   :  { %327 = vmatprep.subr.bf16.mxu0 %v410_v1  ;;  %v286_v48 = vld [vmem:[%s548_s4] ss:$0 sm:$0xff] }
   0x8   :  { %364 = vmatpush3.bf16.msra.mxu1 %v379_v7 }
   0x9   :  { %316 = vmatmul.mubr.msk.bf16.vlgmr.msra.gmra.mrb[0].mxu0 %vm54_vm1, %v28_v5  ;;  %357 = vmatprep.subr.bf16.mxu1 %v410_v1 }
   0xa   :  { %319 = vmatprep.mubr.msk.bf16.mxu0 %vm411_vm0, %v410_v1  ;;  %328 = vmatpush3.bf16.msra.mxu0 %v378_v6 }
   0xb   :  { %329 = vmatprep.subr.bf16.mxu0 %v410_v1 }
   0xc   :  { %365 = vmatpush3.bf16.msra.mxu1 %v380_v11 }
   0xd   :  { %358 = vmatprep.subr.bf16.mxu1 %v410_v1 }
   0xe   :  { %330 = vmatpush3.bf16.msra.mxu0 %v379_v7 }
   0xf   :  { %331 = vmatprep.subr.bf16.mxu0 %v410_v1 }
  0x10   :  { %366 = vmatpush3.bf16.msra.mxu1 %v381_v12 }
  0x11   :  { %320 = vmatmul.mubr.msk.bf16.gmra.mrb[4].mxu0 %vm54_vm1, %v29_v10  ;;  %359 = vmatprep.subr.bf16.mxu1 %v410_v1 }
  0x12   :  { %323 = vmatprep.mubr.msk.bf16.mxu0 %vm411_vm0, %v410_v1  ;;  %332 = vmatpush3.bf16.msra.mxu0 %v380_v11 }
  0x13   :  { %333 = vmatprep.subr.bf16.mxu0 %v410_v1 }
  0x14   :  { %367 = vmatpush3.bf16.msra.mxu1 %v382_v16 }
  0x15   :  { %360 = vmatprep.subr.bf16.mxu1 %v410_v1 }
  0x16   :  { %334 = vmatpush3.bf16.msra.mxu0 %v381_v12 }
  0x17   :  { %335 = vmatprep.subr.bf16.mxu0 %v410_v1 }
  0x18   :  { %368 = vmatpush3.bf16.msra.mxu1 %v383_v17 }
  0x19   :  { %324 = vmatmul.mubr.msk.bf16.gmra.mrb[8].mxu0 %vm54_vm1, %v30_v15  ;;  %361 = vmatprep.subr.bf16.mxu1 %v410_v1 }
  0x1a   :  { %336 = vmatpush3.bf16.msra.mxu0 %v382_v16  ;;  %343 = vmatprep.mubr.msk.bf16.mxu0 %vm411_vm0, %v410_v1 }
  0x1b   :  { %337 = vmatprep.subr.bf16.mxu0 %v410_v1 }
  0x1c   :  { %369 = vmatpush3.bf16.msra.mxu1 %v384_v18 }
  0x1d   :  { %362 = vmatprep.subr.bf16.mxu1 %v410_v1 }
  0x1e   :  { %338 = vmatpush3.bf16.msra.mxu0 %v383_v17 }
  0x1f   :  { %339 = vmatprep.subr.bf16.mxu0 %v410_v1 }
  0x20   :  { %370 = vmatpush3.bf16.msra.mxu1 %v385_v19 }
  0x22   :  { %340 = vmatpush3.bf16.msra.mxu0 %v384_v18 }
  0x23   :  { %341 = vmatprep.subr.bf16.mxu0 %v410_v1 }
  0x26   :  { %342 = vmatpush3.bf16.msra.mxu0 %v385_v19 }
  0xdc   :  { %v98_v21 = vpop.f32.mrb[0].mxu0 }
  0xdd   :  { %v99_v22 = vadd.f32 %v280_v20, %v98_v21  ;;  %v317_v23 = vpop.f32.mrb[1].mxu0 }
  0xde   :  { %v101_v24 = vpop.f32.mrb[2].mxu0 }
  0xdf   :  { %v102_v25 = vadd.f32 %v280_v20, %v101_v24  ;;  %v318_v26 = vpop.f32.mrb[3].mxu0  ;;  %v121_v27 = vmax.f32 %v99_v22, 0.0 }
  0xe1   :  { %v122_v28 = vmax.f32 %v102_v25, 0.0 }
  0xe3   :  { %v127_v29 = vpack.c.bf16 %v122_v28, %v121_v27 }
  0xe4   :  { %v106_v30 = vpop.f32.mrb[4].mxu0 }
  0xe5   :  { %v107_v31 = vadd.f32 %v280_v20, %v106_v30  ;;  %v321_v32 = vpop.f32.mrb[5].mxu0  ;;  %344 = vmatmul.mubr.bf16.vlgmr.msra.gmra.mrb[12].mxu0 %v127_v29 }
  0xe6   :  { %v109_v33 = vpop.f32.mrb[6].mxu0 }
  0xe7   :  { %v110_v34 = vadd.f32 %v280_v20, %v109_v33  ;;  %v322_v35 = vpop.f32.mrb[7].mxu0  ;;  %v123_v36 = vmax.f32 %v107_v31, 0.0 }
  0xe9   :  { %v124_v37 = vmax.f32 %v110_v34, 0.0 }
  0xeb   :  { %v128_v38 = vpack.c.bf16 %v124_v37, %v123_v36 }
  0xec   :  { %v114_v39 = vpop.f32.mrb[8].mxu0 }
  0xed   :  { %v115_v40 = vadd.f32 %v280_v20, %v114_v39  ;;  %v325_v41 = vpop.f32.mrb[9].mxu0  ;;  %348 = vmatmul.mubr.bf16.vlgmr.msra.gmra.mrb[0].mxu1 %v128_v38 }
  0xee   :  { %v117_v42 = vpop.f32.mrb[10].mxu0  ;;  %351 = vmatprep.mubr.msk.bf16.mxu1 %vm411_vm0, %v410_v1 }
  0xef   :  { %v118_v43 = vadd.f32 %v280_v20, %v117_v42  ;;  %v326_v44 = vpop.f32.mrb[11].mxu0  ;;  %v125_v45 = vmax.f32 %v115_v40, 0.0 }
  0xf1   :  { %v126_v46 = vmax.f32 %v118_v43, 0.0 }
  0xf3   :  { %v129_v47 = vpack.c.bf16 %v126_v46, %v125_v45 }
  0xf5   :  { %352 = vmatmul.mubr.bf16.gmra.mrb[4].mxu1 %v129_v47 }
 0x1b8   :  { %v235_v49 = vpop.f32.mrb[12].mxu0 }
 0x1b9   :  { %v236_v50 = vadd.f32 %v286_v48, %v235_v49  ;;  %v345_v51 = vpop.f32.mrb[13].mxu0 }
 0x1ba   :  { %v238_v52 = vpop.f32.mrb[14].mxu0 }
 0x1bb   :  { %258 = vst [vmem:[#allocation2] sm:$0xff] %v236_v50  ;;  %v239_v53 = vadd.f32 %v286_v48, %v238_v52  ;;  %v346_v54 = vpop.f32.mrb[15].mxu0 }
 0x1bd   :  { %259 = vst [vmem:[#allocation2 + $0x8] sm:$0xff] %v239_v53 }
 0x1c0   :  { %v243_v55 = vpop.f32.mrb[0].mxu1 }
 0x1c1   :  { %v244_v56 = vadd.f32 %v286_v48, %v243_v55  ;;  %v349_v57 = vpop.f32.mrb[1].mxu1 }
 0x1c2   :  { %v246_v58 = vpop.f32.mrb[2].mxu1 }
 0x1c3   :  { %260 = vst [vmem:[#allocation2 + $0x10] sm:$0xff] %v244_v56  ;;  %v247_v59 = vadd.f32 %v286_v48, %v246_v58  ;;  %v350_v60 = vpop.f32.mrb[3].mxu1 }
 0x1c5   :  { %261 = vst [vmem:[#allocation2 + $0x18] sm:$0xff] %v247_v59 }
 0x1c8   :  { %v251_v61 = vpop.f32.mrb[4].mxu1 }
 0x1c9   :  { %v252_v62 = vadd.f32 %v286_v48, %v251_v61  ;;  %v353_v63 = vpop.f32.mrb[5].mxu1 }
 0x1ca   :  { %v254_v0 = vpop.f32.mrb[6].mxu1 }
 0x1cb   :  { %262 = vst [vmem:[#allocation2 + $0x20] sm:$0xff] %v252_v62  ;;  %v255_v1 = vadd.f32 %v286_v48, %v254_v0  ;;  %v354_v2 = vpop.f32.mrb[7].mxu1 }
 0x1cd   :  { %263 = vst [vmem:[#allocation2 + $0x28] sm:$0xff] %v255_v1 }
 0x1ce   :  { %268 = vsyncadd [#allocation3], 128  ;;  %s412_s4 = smov [#allocation2]  }
 0x1cf   :  { %s269_s25 = sshll.u32 %s412_s4, 4  ;;  %s270_s25 = int_to_ptr.vmem [resolvable:$true] %s269_s25 }
 0x1d0   :  { %s386_s26 = scalar_lea.vmem %s270_s25, 640  ;;  %s390_s1 = scalar_lea.vmem %s270_s25, 768 }
 0x1d1   :  { %p387_p0 = scmp.ne.s32.totalorder %s270_s25, %s386_s26  ;;  %p391_p1 = scmp.lt.s32.totalorder %s270_s25, %s270_s25 }
 0x1d2   :  { %p392_p2 = scmp.lt.s32.totalorder %s390_s1, %s386_s26 }
 0x1d4   :  { %p393_p3 = por %p392_p2, %p391_p1 }
 0x1d6   :  { %p394_p4 = pnand %p393_p3, %p387_p0 }
 0x1d8   :  { %397 = shalt.err (!%p394_p4)
}
 0x1d9   :  { %s398_s29 = scalar_lea.hbm %s549_s5, 640 }
 0x1da   :  { %p399_p5 = scmp.ne.s32.totalorder %s549_s5, %s398_s29  ;;  %p402_p6 = scmp.lt.u32.totalorder %s398_s29, %s549_s5 }
 0x1dc   :  { %p404_p7 = pnand %p402_p6, %p399_p5 }
 0x1de   :  { %407 = shalt.err (!%p404_p7)
}
 0x1df   :  { %s413_s9 = smov 128   ;;  %s414_s10 = smov 8  }
 0x1e0   :  { %275 = dma.vmem_to_hbm [thread:$0]  %s270_s25, 640, %s549_s5, [#allocation3], %s413_s9, %s413_s9, %s414_s10  }
 0x1e1   :  { %408 = dma.done.wait [#allocation3], 768  }
 0x1e2   :  { %409 = vsyncadd [#allocation3], 4294966528 }
 0x1e3   :  { %279 = vsyncpa [#allocation3], 1 }

</bundles_post_ra>
